<compile_context>
chip_gen: v5e
topology: v5e:2x2
jax: 0.10.0
libtpu: 0.0.40
codegen_flags: <defaults>
</compile_context>

<pallas_src>
import numpy as np
import jax
import jax.numpy as jnp
from jax.experimental import pallas as pl
from jax.experimental.pallas import tpu as pltpu


# ---------------------------------------------------------------------------
# Mask construction (host-side, static — exact port of MaskedLinear.build_mask)
# ---------------------------------------------------------------------------
def build_mask(in_features: int, out_features: int, diagonal_zeros: bool) -> np.ndarray:
    n_in, n_out = in_features, out_features
    assert n_in % n_out == 0 or n_out % n_in == 0
    mask = np.ones((n_in, n_out), dtype=np.float32)
    if n_out >= n_in:
        k = n_out // n_in
        for i in range(n_in):
            mask[i + 1:, i * k:(i + 1) * k] = 0
            if diagonal_zeros:
                mask[i:i + 1, i * k:(i + 1) * k] = 0
    else:
        k = n_in // n_out
        for i in range(n_out):
            mask[(i + 1) * k:, i:i + 1] = 0
            if diagonal_zeros:
                mask[i * k:(i + 1) * k, i:i + 1] = 0
    return mask


def fold_mask(weight, mask, mxu_dtype=None):
    """Fold the static MADE mask into the weight (and optionally cast for the MXU).

    Call ONCE per layer (e.g. at parameter-setup / jit-constant time), not per forward:
    this removes a full (n_in, n_out) read+write of weight HBM traffic from every call.
    """
    w = mask.astype(weight.dtype) * weight
    if mxu_dtype is not None:
        w = w.astype(mxu_dtype)
    return w


# ---------------------------------------------------------------------------
# Kernels
# ---------------------------------------------------------------------------
def _mm_bias_kernel_f32out(x_ref, w_ref, b_ref, o_ref):
    """f32 output: accumulate directly into the resident output block (no scratch)."""
    k = pl.program_id(2)

    @pl.when(k == 0)
    def _init():
        o_ref[...] = jnp.zeros_like(o_ref)

    o_ref[...] += jnp.dot(x_ref[...], w_ref[...],
                          preferred_element_type=jnp.float32)

    @pl.when(k == pl.num_programs(2) - 1)
    def _finalize():
        o_ref[...] += b_ref[...]


def _mm_bias_kernel_acc(x_ref, w_ref, b_ref, o_ref, acc_ref):
    """Non-f32 output: f32 VMEM accumulator, cast + bias on the last K step."""
    k = pl.program_id(2)

    @pl.when(k == 0)
    def _init():
        acc_ref[...] = jnp.zeros_like(acc_ref)

    acc_ref[...] += jnp.dot(x_ref[...], w_ref[...],
                            preferred_element_type=jnp.float32)

    @pl.when(k == pl.num_programs(2) - 1)
    def _finalize():
        o_ref[...] = (acc_ref[...] + b_ref[...]).astype(o_ref.dtype)


def _round_up(x: int, m: int) -> int:
    return ((x + m - 1) // m) * m


# ---------------------------------------------------------------------------
# Wrapper
# ---------------------------------------------------------------------------
def masked_linear(x, masked_weight, bias=None, *,
                  tm=512, tn=512, tk=512, mxu_dtype=None, w_buffers=2,
                  use_kernel=None, vmem_limit_bytes=48 * 1024 * 1024):
    """out = x @ masked_weight + bias with a tiled Pallas TPU kernel.

    x: (B, n_in); masked_weight: (n_in, n_out) with the MADE mask already folded in
    (see fold_mask); bias: (n_out,) or None.
    mxu_dtype: optionally run the MXU in e.g. jnp.bfloat16 (f32 accumulation). This is
    beneficial on v5e, v6e and v7x alike; numerics change, so it is opt-in.
    use_kernel: None = auto heuristic (tiny layers use a fused XLA dot), True/False force.
    vmem_limit_bytes: 48 MiB default leaves headroom under v7x's 64 MiB physical VMEM;
    on v5e/v6e (128 MiB) it can be raised if you also raise the tile sizes.
    """
    B, n_in = x.shape
    n_in_w, n_out = masked_weight.shape
    assert n_in_w == n_in
    out_dtype = x.dtype

    if mxu_dtype is not None:
        if masked_weight.dtype != jnp.dtype(mxu_dtype):
            masked_weight = masked_weight.astype(mxu_dtype)  # ideally pre-cast in fold_mask
        x_mm = x.astype(mxu_dtype)
    else:
        x_mm = x

    if bias is not None:
        bias_f = bias.astype(jnp.float32)
    else:
        bias_f = jnp.zeros((n_out,), dtype=jnp.float32)

    if use_kernel is None:
        # Tiny layers: padding to (8,128) tiles + pallas_call fixed overhead dominate;
        # a single fused XLA dot is strictly faster there on all generations.
        use_kernel = not (B <= 8 and n_in <= 128 and n_out <= 128)

    if not use_kernel:
        out = jnp.dot(x_mm, masked_weight, preferred_element_type=jnp.float32)
        out = out + bias_f[None, :]
        return out.astype(out_dtype)

    # --- Tile sizes, clamped to (padded) problem size, TPU-layout aligned ---
    itemsize = jnp.dtype(x_mm.dtype).itemsize
    m_align = max(8, 32 // itemsize)          # 8 for f32, 16 for bf16, 32 for 1-byte

    tm_eff = min(tm, _round_up(B, m_align))   # sublane-aligned for the packed dtype
    tk_eff = min(tk, _round_up(n_in, 128))    # lane-aligned (last dim of x tile)
    tn_eff = min(tn, _round_up(n_out, 128))   # lane-dense output

    M_pad = _round_up(B, tm_eff)

    # v7x megacore: if the M grid is a single step, make sure the (parallel) N axis
    # has >= 2 steps so both TensorCores get work. Harmless on v5e/v6e (1 TC).
    if M_pad // tm_eff == 1:
        n_tiles_128 = _round_up(n_out, 128) // 128
        if n_tiles_128 >= 2:
            tn_eff = min(tn_eff, ((n_tiles_128 + 1) // 2) * 128)

    N_pad = _round_up(n_out, tn_eff)
    K_pad = _round_up(n_in, tk_eff)

    # Zero-padding preserves the matmul result exactly. Pads are no-ops when aligned.
    x_p = x_mm if (M_pad == B and K_pad == n_in) else \
        jnp.pad(x_mm, ((0, M_pad - B), (0, K_pad - n_in)))
    w_p = masked_weight if (K_pad == n_in and N_pad == n_out) else \
        jnp.pad(masked_weight, ((0, K_pad - n_in), (0, N_pad - n_out)))
    bias2d = bias_f.reshape(1, n_out)
    b_p = bias2d if N_pad == n_out else jnp.pad(bias2d, ((0, 0), (0, N_pad - n_out)))

    grid = (M_pad // tm_eff, N_pad // tn_eff, K_pad // tk_eff)
    grid_m, grid_n, grid_k = grid

    # Optional deeper pipelining of the weight stream for mem-bound shapes.
    w_spec_kwargs = {}
    if w_buffers != 2:
        w_spec_kwargs["pipeline_mode"] = pl.Buffered(w_buffers)
    w_spec = pl.BlockSpec((tk_eff, tn_eff), lambda i, j, k: (k, j), **w_spec_kwargs)

    if jnp.dtype(out_dtype) == jnp.dtype(jnp.float32):
        kernel = _mm_bias_kernel_f32out
        scratch_shapes = []
    else:
        kernel = _mm_bias_kernel_acc
        scratch_shapes = [pltpu.VMEM((tm_eff, tn_eff), jnp.float32)]

    # Advisory cost: count operand re-streaming across the grid (x per N tile, w per M tile).
    cost = pl.CostEstimate(
        flops=2 * M_pad * N_pad * K_pad,
        transcendentals=0,
        bytes_accessed=(x_p.size * x_p.dtype.itemsize * grid_n
                        + w_p.size * w_p.dtype.itemsize * grid_m
                        + b_p.size * b_p.dtype.itemsize * grid_m
                        + M_pad * N_pad * jnp.dtype(out_dtype).itemsize),
    )

    out_p = pl.pallas_call(
        kernel,
        out_shape=jax.ShapeDtypeStruct((M_pad, N_pad), out_dtype),
        grid_spec=pltpu.PrefetchScalarGridSpec(
            num_scalar_prefetch=0,
            grid=grid,
            in_specs=[
                pl.BlockSpec((tm_eff, tk_eff), lambda i, j, k: (i, k)),  # x
                w_spec,                                                  # masked weight
                pl.BlockSpec((1, tn_eff), lambda i, j, k: (0, j)),       # bias
            ],
            out_specs=pl.BlockSpec((tm_eff, tn_eff), lambda i, j, k: (i, j)),
            scratch_shapes=scratch_shapes,
        ),
        compiler_params=pltpu.CompilerParams(
            # M/N parallel (megacore sharding on v7x), K reduction -> arbitrary, last.
            dimension_semantics=("parallel", "parallel", "arbitrary"),
            vmem_limit_bytes=vmem_limit_bytes,
        ),
        cost_estimate=cost,
    )(x_p, w_p, b_p)

    if M_pad == B and N_pad == n_out:
        return out_p
    return out_p[:B, :n_out]


# ---------------------------------------------------------------------------
# Demo / correctness check
# ---------------------------------------------------------------------------
if __name__ == "__main__":
    key = jax.random.PRNGKey(0)

    def run_case(batch, in_features, out_features, diagonal_zeros, case_key,
                 mxu_dtype=None, use_kernel=None):
        kx, kw = jax.random.split(case_key)
        x = jax.random.normal(kx, (batch, in_features), dtype=jnp.float32)
        # Deterministic kaiming_normal-style init, bias zeros (as in the module).
        std = np.sqrt(2.0 / in_features)
        weight = jax.random.normal(kw, (in_features, out_features),
                                   dtype=jnp.float32) * std
        bias = jnp.zeros((out_features,), dtype=jnp.float32)
        mask = jnp.asarray(build_mask(in_features, out_features, diagonal_zeros))

        # Hoisted per-layer preprocessing (done once, NOT per forward call).
        masked_w = fold_mask(weight, mask, mxu_dtype=mxu_dtype)

        out = masked_linear(x, masked_w, bias,
                            mxu_dtype=mxu_dtype, use_kernel=use_kernel)
        out = jax.block_until_ready(out)

        if mxu_dtype is None:
            ref = x @ (mask * weight) + bias[None, :]
            np.testing.assert_allclose(np.asarray(out), np.asarray(ref),
                                       rtol=1e-5, atol=1e-5)
        else:
            ref = (x.astype(mxu_dtype).astype(jnp.float32)
                   @ (mask * weight).astype(mxu_dtype).astype(jnp.float32)
                   + bias[None, :])
            np.testing.assert_allclose(np.asarray(out), np.asarray(ref),
                                       rtol=2e-2, atol=2e-2)

    keys = jax.random.split(key, 5)

    # Hidden-style layer (n_out >= n_in) forced through the Pallas kernel.
    run_case(batch=8, in_features=16, out_features=32,
             diagonal_zeros=False, case_key=keys[0], use_kernel=True)

    # Output-style layer (n_in >= n_out, diagonal_zeros=True), other mask branch.
    run_case(batch=8, in_features=32, out_features=16,
             diagonal_zeros=True, case_key=keys[1], use_kernel=True)

    # Tiny layer via the auto heuristic -> fused XLA dot fallback.
    run_case(batch=8, in_features=16, out_features=32,
             diagonal_zeros=False, case_key=keys[2])

    # Larger layer takes the tiled Pallas path automatically (exercises the N split
    # that keeps both v7x TensorCores busy when the M grid is a single step).
    run_case(batch=64, in_features=128, out_features=256,
             diagonal_zeros=False, case_key=keys[3])

    # bf16 MXU path (beneficial on v5e/v6e/v7x alike), f32 accumulation.
    run_case(batch=64, in_features=128, out_features=256,
             diagonal_zeros=False, case_key=keys[4], mxu_dtype=jnp.bfloat16)

    print("KERNEL_OK")
</pallas_src>

<mosaic_0001>
module attributes {stable_mosaic.version = 11 : i64} {
  func.func @_mm_bias_kernel_f32out(%arg0: i32, %arg1: i32, %arg2: i32, %arg3: memref<8x128xf32, #tpu.memory_space<vmem>>, %arg4: memref<128x128xf32, #tpu.memory_space<vmem>>, %arg5: memref<1x128xf32, #tpu.memory_space<vmem>>, %arg6: memref<8x128xf32, #tpu.memory_space<vmem>>) attributes {dimension_semantics = [#tpu.dimension_semantics<parallel>, #tpu.dimension_semantics<parallel>, #tpu.dimension_semantics<arbitrary>], iteration_bounds = array<i64: 1, 1, 1>, scalar_prefetch = 0 : i64, scratch_operands = 0 : i64, tpu.core_type = #tpu.core_type<tc>, window_params = [{transform_indices = @transform_0, window_bounds = array<i64: 8, 128>}, {transform_indices = @transform_1, window_bounds = array<i64: 128, 128>}, {transform_indices = @transform_2, window_bounds = array<i64: 1, 128>}, {transform_indices = @transform_3, window_bounds = array<i64: 8, 128>}]} {
    %c0_i32 = arith.constant 0 : i32
    %0 = arith.cmpi eq, %arg2, %c0_i32 : i32
    %1 = arith.extui %0 : i1 to i32
    %c0_i32_0 = arith.constant 0 : i32
    %2 = arith.cmpi ne, %1, %c0_i32_0 : i32
    scf.if %2 {
      %cst_10 = arith.constant 0.000000e+00 : f32
      %12 = vector.broadcast %cst_10 : f32 to vector<8x128xf32>
      %c0_11 = arith.constant 0 : index
      %c0_12 = arith.constant 0 : index
      %13 = vector.load %arg6[%c0_11, %c0_12] : memref<8x128xf32, #tpu.memory_space<vmem>>, vector<8x128xf32>
      tpu.vector_store %arg6[%c0_11, %c0_12], %12 {strides = array<i32>} : memref<8x128xf32, #tpu.memory_space<vmem>>, vector<8x128xf32>,
    } else {
    }
    %c0 = arith.constant 0 : index
    %c0_1 = arith.constant 0 : index
    %3 = vector.load %arg6[%c0, %c0_1] : memref<8x128xf32, #tpu.memory_space<vmem>>, vector<8x128xf32>
    %c0_2 = arith.constant 0 : index
    %c0_3 = arith.constant 0 : index
    %4 = vector.load %arg3[%c0_2, %c0_3] : memref<8x128xf32, #tpu.memory_space<vmem>>, vector<8x128xf32>
    %c0_4 = arith.constant 0 : index
    %c0_5 = arith.constant 0 : index
    %5 = vector.load %arg4[%c0_4, %c0_5] : memref<128x128xf32, #tpu.memory_space<vmem>>, vector<128x128xf32>
    %cst = arith.constant dense<0.000000e+00> : vector<8x128xf32>
    %6 = tpu.matmul %4, %5, %cst {dimension_numbers = #tpu.dot_dimension_numbers<[1], [0], [0], [1], [0, 0, 1, 1], [], []>} : vector<8x128xf32>, vector<128x128xf32>, vector<8x128xf32> -> vector<8x128xf32>
    %7 = arith.addf %3, %6 : vector<8x128xf32>
    %c0_6 = arith.constant 0 : index
    %c0_7 = arith.constant 0 : index
    %8 = vector.load %arg6[%c0_6, %c0_7] : memref<8x128xf32, #tpu.memory_space<vmem>>, vector<8x128xf32>
    tpu.vector_store %arg6[%c0_6, %c0_7], %7 {strides = array<i32>} : memref<8x128xf32, #tpu.memory_space<vmem>>, vector<8x128xf32>,
    %c0_i32_8 = arith.constant 0 : i32
    %9 = arith.cmpi eq, %arg2, %c0_i32_8 : i32
    %10 = arith.extui %9 : i1 to i32
    %c0_i32_9 = arith.constant 0 : i32
    %11 = arith.cmpi ne, %10, %c0_i32_9 : i32
    scf.if %11 {
      %c0_10 = arith.constant 0 : index
      %c0_11 = arith.constant 0 : index
      %12 = vector.load %arg6[%c0_10, %c0_11] : memref<8x128xf32, #tpu.memory_space<vmem>>, vector<8x128xf32>
      %c0_12 = arith.constant 0 : index
      %c0_13 = arith.constant 0 : index
      %13 = vector.load %arg5[%c0_12, %c0_13] : memref<1x128xf32, #tpu.memory_space<vmem>>, vector<1x128xf32>
      %14 = vector.broadcast %13 : vector<1x128xf32> to vector<8x128xf32>
      %15 = arith.addf %12, %14 : vector<8x128xf32>
      %c0_14 = arith.constant 0 : index
      %c0_15 = arith.constant 0 : index
      %16 = vector.load %arg6[%c0_14, %c0_15] : memref<8x128xf32, #tpu.memory_space<vmem>>, vector<8x128xf32>
      tpu.vector_store %arg6[%c0_14, %c0_15], %15 {strides = array<i32>} : memref<8x128xf32, #tpu.memory_space<vmem>>, vector<8x128xf32>,
    } else {
    }
    return
  }
  func.func @transform_0(%arg0: i32, %arg1: i32, %arg2: i32) -> (i32, i32) {
    %c0_i32 = arith.constant 0 : i32
    return %arg0, %arg2 : i32, i32
  }
  func.func @transform_1(%arg0: i32, %arg1: i32, %arg2: i32) -> (i32, i32) {
    %c0_i32 = arith.constant 0 : i32
    return %arg2, %arg1 : i32, i32
  }
  func.func @transform_2(%arg0: i32, %arg1: i32, %arg2: i32) -> (i32, i32) {
    %c0_i32 = arith.constant 0 : i32
    %c0_i32_0 = arith.constant 0 : i32
    return %c0_i32, %arg1 : i32, i32
  }
  func.func @transform_3(%arg0: i32, %arg1: i32, %arg2: i32) -> (i32, i32) {
    %c0_i32 = arith.constant 0 : i32
    return %arg0, %arg1 : i32, i32
  }
}

</mosaic_0001>

<bundles_post_ra>
// kernel: tpu_custom_call.1
= control target key start
LH: loop header
LB: loop body
LE: loop exit
PB: predicated region body
PF: predicated region fallthrough
CT: control target
= control target key end

     0   :  { %8 = vsyncpa [#allocation3], 0  ;;  %s240_s0 = inlined_call_operand.hbm [shape: f32[8,128], index: 0, kind: input, shape index: {}]   ;;  %s241_s1 = inlined_call_operand.hbm [shape: f32[128,128], index: 1, kind: input, shape index: {}]   ;;  %s242_s2 = inlined_call_operand.vmem [shape: f32[1,128], index: 2, kind: input, shape index: {}]   ;;  %s243_s3 = inlined_call_operand.hbm [shape: f32[8,128], index: 3, kind: output, shape index: {}]  }
   0x1   :  { %9 = vsyncpa [#allocation6], 0 }
   0x2   :  { %10 = vsyncpa [#allocation4], 0  ;;  %s16_s14 = sshll.u32 %s240_s0, 4  ;;  %s203_s15 = smov [#allocation2]   ;;  %s17_s14 = int_to_ptr.hbm [resolvable:$true] %s16_s14 }
   0x3   :  { %s18_s16 = sshll.u32 %s203_s15, 4  ;;  %s26_s19 = sshll.u32 %s241_s1, 4  ;;  %s19_s16 = int_to_ptr.vmem [resolvable:$true] %s18_s16  ;;  %s27_s19 = int_to_ptr.hbm [resolvable:$true] %s26_s19 }
   0x4   :  { %21 = dma.hbm_to_vmem [thread:$0]  %s17_s14, 128, %s19_s16, [#allocation3]  }
   0x5   :  { %s204_s20 = smov [#allocation5]   ;;  %s205_s22 = smov 128  }
   0x6   :  { %s28_s21 = sshll.u32 %s204_s20, 4  ;;  %s206_s23 = smov 8   ;;  %s29_s21 = int_to_ptr.vmem [resolvable:$true] %s28_s21 }
   0x7   :  { %34 = dma.hbm_to_vmem [thread:$0]  %s27_s19, 2048, %s29_s21, [#allocation6], %s205_s22, %s205_s22, %s206_s23  }
   0x8   :  { %197 = dma.done.wait [#allocation3], 128  }
   0x9   :  { %198 = vsyncadd [#allocation3], 4294967168 }
   0xa   :  { %199 = dma.done.wait [#allocation6], 2048  }
   0xb   :  { %200 = vsyncadd [#allocation6], 4294965248  ;;  %v67_v0 = vld [vmem:[#allocation5 + $0x78] sm:$0xff]  ;;  %v66_v1 = vld [vmem:[#allocation5 + $0x70] sm:$0xff]  ;;  %s207_s24 = smov [#allocation7]   ;;  %s107_s28 = sshll.u32 %s243_s3, 4  ;;  %s108_s28 = int_to_ptr.hbm [resolvable:$true] %s107_s28 }
   0xc   :  { %68 = vmatpush.msra.mxu0 %v67_v0  ;;  %v65_v2 = vld [vmem:[#allocation5 + $0x68] sm:$0xff]  ;;  %v64_v3 = vld [vmem:[#allocation5 + $0x60] sm:$0xff]  ;;  %v63_v4 = vld [vmem:[#allocation5 + $0x58] sm:$0xff]  ;;  %s105_s25 = sshll.u32 %s207_s24, 4  ;;  %s106_s25 = int_to_ptr.vmem [resolvable:$true] %s105_s25 }
   0xd   :  { %v62_v5 = vld [vmem:[#allocation5 + $0x50] sm:$0xff]  ;;  %v61_v6 = vld [vmem:[#allocation5 + $0x48] sm:$0xff]  ;;  %v60_v7 = vld [vmem:[#allocation5 + $0x40] sm:$0xff] }
   0xe   :  { %69 = vmatpush.msra.mxu0 %v66_v1  ;;  %v59_v8 = vld [vmem:[#allocation5 + $0x38] sm:$0xff]  ;;  %v58_v9 = vld [vmem:[#allocation5 + $0x30] sm:$0xff]  ;;  %v57_v10 = vld [vmem:[#allocation5 + $0x28] sm:$0xff] }
   0xf   :  { %v56_v11 = vld [vmem:[#allocation5 + $0x20] sm:$0xff]  ;;  %v55_v12 = vld [vmem:[#allocation5 + $0x18] sm:$0xff]  ;;  %v54_v13 = vld [vmem:[#allocation5 + $0x10] sm:$0xff] }
  0x10   :  { %70 = vmatpush.msra.mxu0 %v65_v2  ;;  %v53_v14 = vld [vmem:[#allocation5 + $0x8] sm:$0xff]  ;;  %v52_v15 = vld [vmem:[#allocation5] sm:$0xff]  ;;  %v51_v16 = vld [vmem:[#allocation2] sm:$0xff] }
  0x11   :  { %v124_v17 = vld [vmem:[%s242_s2] ss:$0 sm:$0xff] }
  0x12   :  { %71 = vmatpush.msra.mxu0 %v64_v3 }
  0x14   :  { %72 = vmatpush.msra.mxu0 %v63_v4 }
  0x16   :  { %73 = vmatpush.msra.mxu0 %v62_v5 }
  0x18   :  { %74 = vmatpush.msra.mxu0 %v61_v6 }
  0x1a   :  { %75 = vmatpush.msra.mxu0 %v60_v7 }
  0x1c   :  { %76 = vmatpush.msra.mxu0 %v59_v8 }
  0x1e   :  { %77 = vmatpush.msra.mxu0 %v58_v9 }
  0x20   :  { %78 = vmatpush.msra.mxu0 %v57_v10 }
  0x22   :  { %79 = vmatpush.msra.mxu0 %v56_v11 }
  0x24   :  { %80 = vmatpush.msra.mxu0 %v55_v12 }
  0x26   :  { %81 = vmatpush.msra.mxu0 %v54_v13 }
  0x28   :  { %82 = vmatpush.msra.mxu0 %v53_v14 }
  0x2a   :  { %83 = vmatpush.msra.mxu0 %v52_v15 }
  0x2b   :  { %84 = vmatmul.f32.vlgmr.msra.gmra.mxu0 %v51_v16 }
  0xa8   :  { %v85_v18 = vpop.f32.mrf.mxu0 }
  0xa9   :  { %v98_v19 = vadd.f32 %v124_v17, %v85_v18 }
  0xab   :  { %99 = vst [vmem:[#allocation7] sm:$0xff] %v98_v19 }
  0xac   :  { %110 = dma.vmem_to_hbm [thread:$0]  %s106_s25, 128, %s108_s28, [#allocation4]  }
  0xad   :  { %201 = dma.done.wait [#allocation4], 128  }
  0xae   :  { %202 = vsyncadd [#allocation4], 4294967168 }
  0xaf   :  { %115 = vsyncpa [#allocation3], 1 }
  0xb0   :  { %116 = vsyncpa [#allocation6], 1 }
  0xb1   :  { %117 = vsyncpa [#allocation4], 1 }

</bundles_post_ra>
